<compile_context>
chip_gen: v5e
topology: v5e:2x2
jax: 0.10.0
libtpu: 0.0.40
codegen_flags: <defaults>
</compile_context>

<pallas_src>
import functools

import numpy as np
import jax
import jax.numpy as jnp
from jax import lax
from jax.experimental import pallas as pl
from jax.experimental.pallas import tpu as pltpu

NEG_SLOPE = 0.01
LN_EPS = 1e-5


def _leaky_relu(x):
    return jnp.where(x > 0, x, NEG_SLOPE * x)


def _round_up(v, m):
    return (v + m - 1) // m * m


def _residual_block_kernel(x_ref, w1_ref, w2_ref, p_ref, o_ref, *, f_valid):
    """One (tm, Fp) row-tile of the fused forward pass."""
    f_pad = x_ref.shape[-1]
    mm_dtype = w1_ref.dtype                       # matmul operand dtype (bf16/f32)

    x_in = x_ref[...]                             # (tm, Fp), input dtype
    x32 = x_in.astype(jnp.float32)

    params = p_ref[...]                           # (8, Fp) f32: b1,b2,gamma,beta,...
    b1, b2 = params[0:1, :], params[1:2, :]
    gamma, beta = params[2:3, :], params[3:4, :]

    # linear1 on the MXU, f32 accumulation.
    h = jnp.dot(x_in.astype(mm_dtype), w1_ref[...],
                preferred_element_type=jnp.float32) + b1

    # LayerNorm over the *valid* features only (padding lanes of h are exactly
    # zero because W1/b1 are zero-padded).  Biased variance, eps=1e-5, f32.
    inv_f = jnp.float32(1.0 / f_valid)
    mean = jnp.sum(h, axis=-1, keepdims=True) * inv_f
    cent = h - mean
    if f_valid == f_pad:
        sq = cent * cent
    else:
        lane = lax.broadcasted_iota(jnp.int32, (1, f_pad), 1)
        sq = jnp.where(lane < f_valid, cent * cent, 0.0)
    var = jnp.sum(sq, axis=-1, keepdims=True) * inv_f
    # normalize + affine in one expression (fewer live (tm, Fp) f32 temporaries);
    # gamma/beta zero-padded -> padded lanes stay exactly 0.
    h = cent * (lax.rsqrt(var + LN_EPS) * gamma) + beta

    h = _leaky_relu(h)
    # TODO(synk): Dropout(p=0.2) is implemented as inference-mode identity;
    # training-mode dropout would use pltpu.prng_seed / pltpu.prng_random_bits.

    # linear2 on the MXU, f32 accumulation, then residual + LeakyReLU in f32.
    out = jnp.dot(h.astype(mm_dtype), w2_ref[...],
                  preferred_element_type=jnp.float32) + b2
    out = out + x32
    o_ref[...] = _leaky_relu(out).astype(o_ref.dtype)


def prepare_residual_block_weights(w1, b1, w2, b2, gamma, beta, *,
                                   matmul_dtype=jnp.bfloat16):
    """One-time (model-load) packing: W^T in matmul dtype, lane-padded to a
    multiple of 128, plus b1/b2/gamma/beta packed into one (8, Fp) f32 block."""
    F = w1.shape[0]
    assert w1.shape == (F, F) and w2.shape == (F, F), "residual add needs in==out features"
    Fp = max(_round_up(F, 128), 128)
    mm = np.dtype(matmul_dtype)
    if Fp == F:
        w1p = w1.T.astype(mm)
        w2p = w2.T.astype(mm)
    else:
        w1p = jnp.zeros((Fp, Fp), mm).at[:F, :F].set(w1.T.astype(mm))
        w2p = jnp.zeros((Fp, Fp), mm).at[:F, :F].set(w2.T.astype(mm))
    params = jnp.zeros((8, Fp), jnp.float32)
    params = params.at[0, :F].set(b1.astype(jnp.float32))
    params = params.at[1, :F].set(b2.astype(jnp.float32))
    params = params.at[2, :F].set(gamma.astype(jnp.float32))
    params = params.at[3, :F].set(beta.astype(jnp.float32))
    return w1p, w2p, params


def _vmem_cap_bytes():
    try:
        phys = int(pltpu.get_tpu_info().vmem_capacity_bytes)
        if phys <= 0:
            raise ValueError("bad vmem capacity")
    except Exception:
        phys = 64 * 1024 * 1024            # conservative fallback (v7x per-TC)
    return (phys * 3) // 4                 # ~48 MiB on v7x, ~96 MiB on v5e/v6e


@functools.partial(jax.jit, static_argnames=("tm", "single_buffer_weights"))
def _residual_block_impl(x, w1p, w2p, params, *, tm, single_buffer_weights):
    orig_shape = x.shape
    F = orig_shape[-1]
    Fp = w1p.shape[-1]
    assert w1p.shape == (Fp, Fp) and w2p.shape == (Fp, Fp)
    assert Fp >= F and Fp % 128 == 0

    M = 1
    for d in orig_shape[:-1]:
        M *= d
    x2d = x.reshape(M, F)
    x_itemsize = np.dtype(x2d.dtype).itemsize
    mm_itemsize = np.dtype(w1p.dtype).itemsize

    # Fast path: no feature pad (and no output slice) when F is lane-dense.
    xp = x2d if Fp == F else jnp.zeros((M, Fp), x2d.dtype).at[:, :F].set(x2d)

    # Row tile: dtype-native sublane multiple; never pad M (ragged last tile's
    # OOB rows are per-row independent garbage whose writes are dropped);
    # ensure >= 2 parallel tiles so both v7x TensorCores get work.
    sub = {1: 32, 2: 16, 4: 8}.get(x_itemsize, 8)
    tm_eff = max(sub, min(_round_up(tm, sub), _round_up(M, sub)))
    if pl.cdiv(M, tm_eff) < 2 and M > sub:
        tm_eff = max(sub, _round_up(pl.cdiv(M, 2), sub))
    grid = (pl.cdiv(M, tm_eff),)

    # VMEM budget: resident weights (+params) x buffer count, double-buffered
    # x/out row tiles, f32 LN temporaries; capped at 3/4 of physical VMEM.
    wbuf = 1 if single_buffer_weights else 2
    est = (wbuf * (2 * Fp * Fp * mm_itemsize + 8 * Fp * 4)
           + 2 * 2 * tm_eff * Fp * x_itemsize
           + 6 * tm_eff * Fp * 4)
    vmem_limit = int(min(max(est * 5 // 4, 32 * 1024 * 1024), _vmem_cap_bytes()))
    # TODO(synk): if resident (Fp,Fp) weights ever exceed this budget (e.g.
    # F>=2048 f32 on v7x's 64 MiB VMEM), switch to a K/N-tiled grid axis marked
    # "arbitrary" with an f32 VMEM accumulator instead of whole-weight residency.

    wmode = {"pipeline_mode": pl.Buffered(1)} if single_buffer_weights else {}

    cost = pl.CostEstimate(
        flops=int(4 * M * F * F + 12 * M * F),
        transcendentals=int(M),
        bytes_accessed=int(2 * M * F * x_itemsize
                           + 2 * Fp * Fp * mm_itemsize + 8 * Fp * 4),
    )

    kernel = functools.partial(_residual_block_kernel, f_valid=F)

    outp = pl.pallas_call(
        kernel,
        out_shape=jax.ShapeDtypeStruct((M, Fp), x2d.dtype),
        grid_spec=pltpu.PrefetchScalarGridSpec(
            num_scalar_prefetch=0,
            grid=grid,
            in_specs=[
                pl.BlockSpec((tm_eff, Fp), lambda i: (i, 0)),       # x row tile
                pl.BlockSpec((Fp, Fp), lambda i: (0, 0), **wmode),  # W1^T (grid-invariant)
                pl.BlockSpec((Fp, Fp), lambda i: (0, 0), **wmode),  # W2^T (grid-invariant)
                pl.BlockSpec((8, Fp), lambda i: (0, 0), **wmode),   # [b1,b2,gamma,beta]
            ],
            out_specs=pl.BlockSpec((tm_eff, Fp), lambda i: (i, 0)),
        ),
        compiler_params=pltpu.CompilerParams(
            dimension_semantics=("parallel",),
            vmem_limit_bytes=vmem_limit),
        cost_estimate=cost,
    )(xp, w1p, w2p, params)

    out2d = outp if Fp == F else outp[:, :F]
    return out2d.reshape(orig_shape)


_SINGLE_BUFFER_WEIGHTS_OK = True   # flips off if pipeline_mode=pl.Buffered(1) is rejected


def residual_block_prepared(x, w1p, w2p, params, *, tm=256):
    """Fused forward with pre-packed weights (prepare_residual_block_weights)."""
    global _SINGLE_BUFFER_WEIGHTS_OK
    if _SINGLE_BUFFER_WEIGHTS_OK:
        try:
            return _residual_block_impl(x, w1p, w2p, params, tm=tm,
                                        single_buffer_weights=True)
        except Exception:
            _SINGLE_BUFFER_WEIGHTS_OK = False
    return _residual_block_impl(x, w1p, w2p, params, tm=tm,
                                single_buffer_weights=False)


def residual_block(x, w1, b1, w2, b2, gamma, beta, *, tm=256,
                   matmul_dtype=jnp.bfloat16):
    """Convenience entry: packs weights per call.  For a serving loop, call
    prepare_residual_block_weights() once and use residual_block_prepared()."""
    packed = prepare_residual_block_weights(w1, b1, w2, b2, gamma, beta,
                                            matmul_dtype=matmul_dtype)
    return residual_block_prepared(x, *packed, tm=tm)


def reference(x, w1, b1, w2, b2, gamma, beta, matmul_dtype=jnp.float32):
    md = matmul_dtype
    h = jnp.dot(x.astype(md), w1.T.astype(md),
                preferred_element_type=jnp.float32) + b1
    mean = jnp.mean(h, axis=-1, keepdims=True)
    var = jnp.mean((h - mean) ** 2, axis=-1, keepdims=True)
    h = (h - mean) / jnp.sqrt(var + LN_EPS) * gamma + beta
    h = _leaky_relu(h)
    out = jnp.dot(h.astype(md), w2.T.astype(md),
                  preferred_element_type=jnp.float32) + b2
    out = out + x.astype(jnp.float32)
    return _leaky_relu(out).astype(x.dtype)


if __name__ == "__main__":
    # ---- Test 1: f32-operand path, toy shape (exercises F padding 32 -> 128,
    #              2-tile grid for dual-TC, convenience wrapper) ----
    batch, seq, hidden = 2, 8, 32
    k = jax.random.split(jax.random.PRNGKey(0), 7)
    x = jax.random.normal(k[0], (batch, seq, hidden), dtype=jnp.float32)
    bound = 1.0 / float(np.sqrt(hidden))
    w1 = jax.random.uniform(k[1], (hidden, hidden), minval=-bound, maxval=bound)
    b1 = jax.random.uniform(k[2], (hidden,), minval=-bound, maxval=bound)
    w2 = jax.random.uniform(k[3], (hidden, hidden), minval=-bound, maxval=bound)
    b2 = jax.random.uniform(k[4], (hidden,), minval=-bound, maxval=bound)
    gamma = jax.random.uniform(k[5], (hidden,), minval=0.5, maxval=1.5)
    beta = jax.random.uniform(k[6], (hidden,), minval=-0.5, maxval=0.5)

    out = residual_block(x, w1, b1, w2, b2, gamma, beta, tm=256,
                         matmul_dtype=jnp.float32)
    jax.block_until_ready(out)
    ref = reference(x, w1, b1, w2, b2, gamma, beta, matmul_dtype=jnp.float32)
    assert out.shape == x.shape
    assert jnp.allclose(out, ref, atol=2e-5, rtol=2e-5), "f32 mismatch vs reference"

    # ---- Test 2: default bf16-operand matmuls, lane-dense fast path (F=128,
    #              no pad/slice), uneven last row tile, prepared-weights path ----
    b_, s_, h_ = 4, 100, 128
    k2 = jax.random.split(jax.random.PRNGKey(1), 7)
    x2 = jax.random.normal(k2[0], (b_, s_, h_), dtype=jnp.float32)
    bound2 = 1.0 / float(np.sqrt(h_))
    w1b = jax.random.uniform(k2[1], (h_, h_), minval=-bound2, maxval=bound2)
    b1b = jax.random.uniform(k2[2], (h_,), minval=-bound2, maxval=bound2)
    w2b = jax.random.uniform(k2[3], (h_, h_), minval=-bound2, maxval=bound2)
    b2b = jax.random.uniform(k2[4], (h_,), minval=-bound2, maxval=bound2)
    g2 = jax.random.uniform(k2[5], (h_,), minval=0.5, maxval=1.5)
    be2 = jax.random.uniform(k2[6], (h_,), minval=-0.5, maxval=0.5)

    packed = prepare_residual_block_weights(w1b, b1b, w2b, b2b, g2, be2,
                                            matmul_dtype=jnp.bfloat16)
    out2 = residual_block_prepared(x2, *packed, tm=256)
    jax.block_until_ready(out2)
    ref2 = reference(x2, w1b, b1b, w2b, b2b, g2, be2, matmul_dtype=jnp.bfloat16)
    assert out2.shape == x2.shape
    assert jnp.allclose(out2, ref2, atol=2e-2, rtol=2e-2), "bf16 mismatch vs reference"

    print("KERNEL_OK")
</pallas_src>

<mosaic_0001>
module attributes {stable_mosaic.version = 11 : i64} {
  func.func @_residual_block_kernel(%arg0: i32, %arg1: memref<8x128xf32, #tpu.memory_space<vmem>>, %arg2: memref<128x128xf32, #tpu.memory_space<vmem>>, %arg3: memref<128x128xf32, #tpu.memory_space<vmem>>, %arg4: memref<8x128xf32, #tpu.memory_space<vmem>>, %arg5: memref<8x128xf32, #tpu.memory_space<vmem>>) attributes {dimension_semantics = [#tpu.dimension_semantics<parallel>], iteration_bounds = array<i64: 2>, scalar_prefetch = 0 : i64, scratch_operands = 0 : i64, tpu.core_type = #tpu.core_type<tc>, window_params = [{transform_indices = @transform_0, window_bounds = array<i64: 8, 128>}, {pipeline_mode = #tpu.pipeline_mode<synchronous>, transform_indices = @transform_1, window_bounds = array<i64: 128, 128>}, {pipeline_mode = #tpu.pipeline_mode<synchronous>, transform_indices = @transform_2, window_bounds = array<i64: 128, 128>}, {pipeline_mode = #tpu.pipeline_mode<synchronous>, transform_indices = @transform_3, window_bounds = array<i64: 8, 128>}, {transform_indices = @transform_4, window_bounds = array<i64: 8, 128>}]} {
    %c0 = arith.constant 0 : index
    %c0_0 = arith.constant 0 : index
    %0 = vector.load %arg1[%c0, %c0_0] : memref<8x128xf32, #tpu.memory_space<vmem>>, vector<8x128xf32>
    %c0_1 = arith.constant 0 : index
    %c0_2 = arith.constant 0 : index
    %1 = vector.load %arg4[%c0_1, %c0_2] : memref<8x128xf32, #tpu.memory_space<vmem>>, vector<8x128xf32>
    %2 = vector.extract_strided_slice %1 {offsets = [0, 0], sizes = [1, 128], strides = [1, 1]} : vector<8x128xf32> to vector<1x128xf32>
    %3 = vector.extract_strided_slice %1 {offsets = [1, 0], sizes = [1, 128], strides = [1, 1]} : vector<8x128xf32> to vector<1x128xf32>
    %4 = vector.extract_strided_slice %1 {offsets = [2, 0], sizes = [1, 128], strides = [1, 1]} : vector<8x128xf32> to vector<1x128xf32>
    %5 = vector.extract_strided_slice %1 {offsets = [3, 0], sizes = [1, 128], strides = [1, 1]} : vector<8x128xf32> to vector<1x128xf32>
    %c0_3 = arith.constant 0 : index
    %c0_4 = arith.constant 0 : index
    %6 = vector.load %arg2[%c0_3, %c0_4] : memref<128x128xf32, #tpu.memory_space<vmem>>, vector<128x128xf32>
    %cst = arith.constant dense<0.000000e+00> : vector<8x128xf32>
    %7 = tpu.matmul %0, %6, %cst {dimension_numbers = #tpu.dot_dimension_numbers<[1], [0], [0], [1], [0, 0, 1, 1], [], []>} : vector<8x128xf32>, vector<128x128xf32>, vector<8x128xf32> -> vector<8x128xf32>
    %8 = vector.broadcast %2 : vector<1x128xf32> to vector<8x128xf32>
    %9 = arith.addf %7, %8 : vector<8x128xf32>
    %cst_5 = arith.constant dense<0.000000e+00> : vector<8xf32>
    %10 = vector.multi_reduction <add>, %9, %cst_5 [1] : vector<8x128xf32> to vector<8xf32>
    %11 = vector.shape_cast %10 : vector<8xf32> to vector<8x1xf32>
    %cst_6 = arith.constant 3.125000e-02 : f32
    %12 = vector.broadcast %cst_6 : f32 to vector<8x1xf32>
    %13 = arith.mulf %11, %12 : vector<8x1xf32>
    %14 = vector.broadcast %13 : vector<8x1xf32> to vector<8x128xf32>
    %15 = arith.subf %9, %14 : vector<8x128xf32>
    %16 = tpu.iota {dimensions = array<i32: 1>} : vector<1x128xi32>
    %c32_i32 = arith.constant 32 : i32
    %17 = vector.broadcast %c32_i32 : i32 to vector<1x128xi32>
    %18 = arith.cmpi slt, %16, %17 : vector<1x128xi32>
    %19 = arith.mulf %15, %15 : vector<8x128xf32>
    %cst_7 = arith.constant 0.000000e+00 : f32
    %20 = vector.shape_cast %18 : vector<1x128xi1> to vector<1x128xi1>
    %21 = vector.broadcast %20 : vector<1x128xi1> to vector<8x128xi1>
    %22 = vector.broadcast %cst_7 : f32 to vector<8x128xf32>
    %23 = arith.select %21, %19, %22 : vector<8x128xi1>, vector<8x128xf32>
    %cst_8 = arith.constant dense<0.000000e+00> : vector<8xf32>
    %24 = vector.multi_reduction <add>, %23, %cst_8 [1] : vector<8x128xf32> to vector<8xf32>
    %25 = vector.shape_cast %24 : vector<8xf32> to vector<8x1xf32>
    %cst_9 = arith.constant 3.125000e-02 : f32
    %26 = vector.broadcast %cst_9 : f32 to vector<8x1xf32>
    %27 = arith.mulf %25, %26 : vector<8x1xf32>
    %cst_10 = arith.constant 9.99999974E-6 : f32
    %28 = vector.broadcast %cst_10 : f32 to vector<8x1xf32>
    %29 = arith.addf %27, %28 : vector<8x1xf32>
    %30 = math.rsqrt %29 : vector<8x1xf32>
    %31 = vector.broadcast %30 : vector<8x1xf32> to vector<8x128xf32>
    %32 = vector.broadcast %4 : vector<1x128xf32> to vector<8x128xf32>
    %33 = arith.mulf %31, %32 : vector<8x128xf32>
    %34 = arith.mulf %15, %33 : vector<8x128xf32>
    %35 = vector.broadcast %5 : vector<1x128xf32> to vector<8x128xf32>
    %36 = arith.addf %34, %35 : vector<8x128xf32>
    %cst_11 = arith.constant 0.000000e+00 : f32
    %37 = vector.broadcast %cst_11 : f32 to vector<8x128xf32>
    %38 = arith.cmpf ogt, %36, %37 : vector<8x128xf32>
    %cst_12 = arith.constant 0.00999999977 : f32
    %39 = vector.broadcast %cst_12 : f32 to vector<8x128xf32>
    %40 = arith.mulf %39, %36 : vector<8x128xf32>
    %41 = arith.select %38, %36, %40 : vector<8x128xi1>, vector<8x128xf32>
    %c0_13 = arith.constant 0 : index
    %c0_14 = arith.constant 0 : index
    %42 = vector.load %arg3[%c0_13, %c0_14] : memref<128x128xf32, #tpu.memory_space<vmem>>, vector<128x128xf32>
    %cst_15 = arith.constant dense<0.000000e+00> : vector<8x128xf32>
    %43 = tpu.matmul %41, %42, %cst_15 {dimension_numbers = #tpu.dot_dimension_numbers<[1], [0], [0], [1], [0, 0, 1, 1], [], []>} : vector<8x128xf32>, vector<128x128xf32>, vector<8x128xf32> -> vector<8x128xf32>
    %44 = vector.broadcast %3 : vector<1x128xf32> to vector<8x128xf32>
    %45 = arith.addf %43, %44 : vector<8x128xf32>
    %46 = arith.addf %45, %0 : vector<8x128xf32>
    %cst_16 = arith.constant 0.000000e+00 : f32
    %47 = vector.broadcast %cst_16 : f32 to vector<8x128xf32>
    %48 = arith.cmpf ogt, %46, %47 : vector<8x128xf32>
    %cst_17 = arith.constant 0.00999999977 : f32
    %49 = vector.broadcast %cst_17 : f32 to vector<8x128xf32>
    %50 = arith.mulf %49, %46 : vector<8x128xf32>
    %51 = arith.select %48, %46, %50 : vector<8x128xi1>, vector<8x128xf32>
    %c0_18 = arith.constant 0 : index
    %c0_19 = arith.constant 0 : index
    %52 = vector.load %arg5[%c0_18, %c0_19] : memref<8x128xf32, #tpu.memory_space<vmem>>, vector<8x128xf32>
    tpu.vector_store %arg5[%c0_18, %c0_19], %51 {strides = array<i32>} : memref<8x128xf32, #tpu.memory_space<vmem>>, vector<8x128xf32>,
    return
  }
  func.func @transform_0(%arg0: i32) -> (i32, i32) {
    %c0_i32 = arith.constant 0 : i32
    %c0_i32_0 = arith.constant 0 : i32
    return %arg0, %c0_i32 : i32, i32
  }
  func.func @transform_1(%arg0: i32) -> (i32, i32) {
    %c0_i32 = arith.constant 0 : i32
    %c0_i32_0 = arith.constant 0 : i32
    %c0_i32_1 = arith.constant 0 : i32
    return %c0_i32, %c0_i32_0 : i32, i32
  }
  func.func @transform_2(%arg0: i32) -> (i32, i32) {
    %c0_i32 = arith.constant 0 : i32
    %c0_i32_0 = arith.constant 0 : i32
    %c0_i32_1 = arith.constant 0 : i32
    return %c0_i32, %c0_i32_0 : i32, i32
  }
  func.func @transform_3(%arg0: i32) -> (i32, i32) {
    %c0_i32 = arith.constant 0 : i32
    %c0_i32_0 = arith.constant 0 : i32
    %c0_i32_1 = arith.constant 0 : i32
    return %c0_i32, %c0_i32_0 : i32, i32
  }
  func.func @transform_4(%arg0: i32) -> (i32, i32) {
    %c0_i32 = arith.constant 0 : i32
    %c0_i32_0 = arith.constant 0 : i32
    return %arg0, %c0_i32 : i32, i32
  }
}

module attributes {stable_mosaic.version = 11 : i64} {
  func.func @_residual_block_kernel(%arg0: i32, %arg1: memref<8x128xf32, #tpu.memory_space<vmem>>, %arg2: memref<128x128xf32, #tpu.memory_space<vmem>>, %arg3: memref<128x128xf32, #tpu.memory_space<vmem>>, %arg4: memref<8x128xf32, #tpu.memory_space<vmem>>, %arg5: memref<8x128xf32, #tpu.memory_space<vmem>>) attributes {dimension_semantics = [#tpu.dimension_semantics<parallel>], iteration_bounds = array<i64: 2>, scalar_prefetch = 0 : i64, scratch_operands = 0 : i64, tpu.core_type = #tpu.core_type<tc>, window_params = [{transform_indices = @transform_0, window_bounds = array<i64: 8, 128>}, {pipeline_mode = #tpu.pipeline_mode<synchronous>, transform_indices = @transform_1, window_bounds = array<i64: 128, 128>}, {pipeline_mode = #tpu.pipeline_mode<synchronous>, transform_indices = @transform_2, window_bounds = array<i64: 128, 128>}, {pipeline_mode = #tpu.pipeline_mode<synchronous>, transform_indices = @transform_3, window_bounds = array<i64: 8, 128>}, {transform_indices = @transform_4, window_bounds = array<i64: 8, 128>}]} {
    %c0 = arith.constant 0 : index
    %c0_0 = arith.constant 0 : index
    %0 = vector.load %arg1[%c0, %c0_0] : memref<8x128xf32, #tpu.memory_space<vmem>>, vector<8x128xf32>
    %c0_1 = arith.constant 0 : index
    %c0_2 = arith.constant 0 : index
    %1 = vector.load %arg4[%c0_1, %c0_2] : memref<8x128xf32, #tpu.memory_space<vmem>>, vector<8x128xf32>
    %2 = vector.extract_strided_slice %1 {offsets = [0, 0], sizes = [1, 128], strides = [1, 1]} : vector<8x128xf32> to vector<1x128xf32>
    %3 = vector.extract_strided_slice %1 {offsets = [1, 0], sizes = [1, 128], strides = [1, 1]} : vector<8x128xf32> to vector<1x128xf32>
    %4 = vector.extract_strided_slice %1 {offsets = [2, 0], sizes = [1, 128], strides = [1, 1]} : vector<8x128xf32> to vector<1x128xf32>
    %5 = vector.extract_strided_slice %1 {offsets = [3, 0], sizes = [1, 128], strides = [1, 1]} : vector<8x128xf32> to vector<1x128xf32>
    %c0_3 = arith.constant 0 : index
    %c0_4 = arith.constant 0 : index
    %6 = vector.load %arg2[%c0_3, %c0_4] : memref<128x128xf32, #tpu.memory_space<vmem>>, vector<128x128xf32>
    %cst = arith.constant dense<0.000000e+00> : vector<8x128xf32>
    %7 = tpu.matmul %0, %6, %cst {dimension_numbers = #tpu.dot_dimension_numbers<[1], [0], [0], [1], [0, 0, 1, 1], [], []>} : vector<8x128xf32>, vector<128x128xf32>, vector<8x128xf32> -> vector<8x128xf32>
    %8 = vector.broadcast %2 : vector<1x128xf32> to vector<8x128xf32>
    %9 = arith.addf %7, %8 : vector<8x128xf32>
    %cst_5 = arith.constant dense<0.000000e+00> : vector<8xf32>
    %10 = vector.multi_reduction <add>, %9, %cst_5 [1] : vector<8x128xf32> to vector<8xf32>
    %11 = vector.shape_cast %10 : vector<8xf32> to vector<8x1xf32>
    %cst_6 = arith.constant 3.125000e-02 : f32
    %12 = vector.broadcast %cst_6 : f32 to vector<8x1xf32>
    %13 = arith.mulf %11, %12 : vector<8x1xf32>
    %14 = vector.broadcast %13 : vector<8x1xf32> to vector<8x128xf32>
    %15 = arith.subf %9, %14 : vector<8x128xf32>
    %16 = tpu.iota {dimensions = array<i32: 1>} : vector<1x128xi32>
    %c32_i32 = arith.constant 32 : i32
    %17 = vector.broadcast %c32_i32 : i32 to vector<1x128xi32>
    %18 = arith.cmpi slt, %16, %17 : vector<1x128xi32>
    %19 = arith.mulf %15, %15 : vector<8x128xf32>
    %cst_7 = arith.constant 0.000000e+00 : f32
    %20 = vector.shape_cast %18 : vector<1x128xi1> to vector<1x128xi1>
    %21 = vector.broadcast %20 : vector<1x128xi1> to vector<8x128xi1>
    %22 = vector.broadcast %cst_7 : f32 to vector<8x128xf32>
    %23 = arith.select %21, %19, %22 : vector<8x128xi1>, vector<8x128xf32>
    %cst_8 = arith.constant dense<0.000000e+00> : vector<8xf32>
    %24 = vector.multi_reduction <add>, %23, %cst_8 [1] : vector<8x128xf32> to vector<8xf32>
    %25 = vector.shape_cast %24 : vector<8xf32> to vector<8x1xf32>
    %cst_9 = arith.constant 3.125000e-02 : f32
    %26 = vector.broadcast %cst_9 : f32 to vector<8x1xf32>
    %27 = arith.mulf %25, %26 : vector<8x1xf32>
    %cst_10 = arith.constant 9.99999974E-6 : f32
    %28 = vector.broadcast %cst_10 : f32 to vector<8x1xf32>
    %29 = arith.addf %27, %28 : vector<8x1xf32>
    %30 = math.rsqrt %29 : vector<8x1xf32>
    %31 = vector.broadcast %30 : vector<8x1xf32> to vector<8x128xf32>
    %32 = vector.broadcast %4 : vector<1x128xf32> to vector<8x128xf32>
    %33 = arith.mulf %31, %32 : vector<8x128xf32>
    %34 = arith.mulf %15, %33 : vector<8x128xf32>
    %35 = vector.broadcast %5 : vector<1x128xf32> to vector<8x128xf32>
    %36 = arith.addf %34, %35 : vector<8x128xf32>
    %cst_11 = arith.constant 0.000000e+00 : f32
    %37 = vector.broadcast %cst_11 : f32 to vector<8x128xf32>
    %38 = arith.cmpf ogt, %36, %37 : vector<8x128xf32>
    %cst_12 = arith.constant 0.00999999977 : f32
    %39 = vector.broadcast %cst_12 : f32 to vector<8x128xf32>
    %40 = arith.mulf %39, %36 : vector<8x128xf32>
    %41 = arith.select %38, %36, %40 : vector<8x128xi1>, vector<8x128xf32>
    %c0_13 = arith.constant 0 : index
    %c0_14 = arith.constant 0 : index
    %42 = vector.load %arg3[%c0_13, %c0_14] : memref<128x128xf32, #tpu.memory_space<vmem>>, vector<128x128xf32>
    %cst_15 = arith.constant dense<0.000000e+00> : vector<8x128xf32>
    %43 = tpu.matmul %41, %42, %cst_15 {dimension_numbers = #tpu.dot_dimension_numbers<[1], [0], [0], [1], [0, 0, 1, 1], [], []>} : vector<8x128xf32>, vector<128x128xf32>, vector<8x128xf32> -> vector<8x128xf32>
    %44 = vector.broadcast %3 : vector<1x128xf32> to vector<8x128xf32>
    %45 = arith.addf %43, %44 : vector<8x128xf32>
    %46 = arith.addf %45, %0 : vector<8x128xf32>
    %cst_16 = arith.constant 0.000000e+00 : f32
    %47 = vector.broadcast %cst_16 : f32 to vector<8x128xf32>
    %48 = arith.cmpf ogt, %46, %47 : vector<8x128xf32>
    %cst_17 = arith.constant 0.00999999977 : f32
    %49 = vector.broadcast %cst_17 : f32 to vector<8x128xf32>
    %50 = arith.mulf %49, %46 : vector<8x128xf32>
    %51 = arith.select %48, %46, %50 : vector<8x128xi1>, vector<8x128xf32>
    %c0_18 = arith.constant 0 : index
    %c0_19 = arith.constant 0 : index
    %52 = vector.load %arg5[%c0_18, %c0_19] : memref<8x128xf32, #tpu.memory_space<vmem>>, vector<8x128xf32>
    tpu.vector_store %arg5[%c0_18, %c0_19], %51 {strides = array<i32>} : memref<8x128xf32, #tpu.memory_space<vmem>>, vector<8x128xf32>,
    return
  }
  func.func @transform_0(%arg0: i32) -> (i32, i32) {
    %c0_i32 = arith.constant 0 : i32
    %c0_i32_0 = arith.constant 0 : i32
    return %arg0, %c0_i32 : i32, i32
  }
  func.func @transform_1(%arg0: i32) -> (i32, i32) {
    %c0_i32 = arith.constant 0 : i32
    %c0_i32_0 = arith.constant 0 : i32
    %c0_i32_1 = arith.constant 0 : i32
    return %c0_i32, %c0_i32_0 : i32, i32
  }
  func.func @transform_2(%arg0: i32) -> (i32, i32) {
    %c0_i32 = arith.constant 0 : i32
    %c0_i32_0 = arith.constant 0 : i32
    %c0_i32_1 = arith.constant 0 : i32
    return %c0_i32, %c0_i32_0 : i32, i32
  }
  func.func @transform_3(%arg0: i32) -> (i32, i32) {
    %c0_i32 = arith.constant 0 : i32
    %c0_i32_0 = arith.constant 0 : i32
    %c0_i32_1 = arith.constant 0 : i32
    return %c0_i32, %c0_i32_0 : i32, i32
  }
  func.func @transform_4(%arg0: i32) -> (i32, i32) {
    %c0_i32 = arith.constant 0 : i32
    %c0_i32_0 = arith.constant 0 : i32
    return %arg0, %c0_i32 : i32, i32
  }
}

</mosaic_0001>

<bundles_post_ra>
// kernel: _residual_block_impl.1
= control target key start
LH: loop header
LB: loop body
LE: loop exit
PB: predicated region body
PF: predicated region fallthrough
CT: control target
= control target key end

     0   :  { %9 = vsyncpa [#allocation3], 0  ;;  %s633_s0 = inlined_call_operand.vmem [shape: f32[16,128], index: 0, kind: input, shape index: {}]   ;;  %s634_s1 = inlined_call_operand.hbm [shape: f32[128,128], index: 1, kind: input, shape index: {}]   ;;  %s635_s2 = inlined_call_operand.hbm [shape: f32[128,128], index: 2, kind: input, shape index: {}]   ;;  %s636_s3 = inlined_call_operand.vmem [shape: f32[8,128], index: 3, kind: input, shape index: {}]   ;;  %s637_s4 = inlined_call_operand.vmem [shape: f32[16,128], index: 4, kind: output, shape index: {}]  }
   0x1   :  { %10 = vsyncpa [#allocation5], 0  ;;  %s567_s15 = smov 0  }
   0x2 LB: > { %s147_s18 = sshll.u32 %s634_s1, 4  ;;  %s576_s19 = sadd.s32 4294967295, %s536_s15   ;;  %s536_s15 = sphi %s567_s15, %s16_s15   ;;  %s148_s18 = int_to_ptr.hbm [resolvable:$true] %s147_s18 }
   0x3   : > { %p418_p0 = scmp.ge.s32.totalorder %s536_s15, 1  ;;  %p136_p1 = scmp.lt.s32.totalorder %s536_s15, 3 }
   0x4   : > { %p444_p2 = scmp.eq.s32.totalorder %s576_s19, 0  ;;  %s538_s21 = smov [#allocation2]  }
   0x5   : > { %p581_p3 = pnand %p418_p0, %p136_p1  ;;  %s149_s22 = sshll.u32 %s538_s21, 4  ;;  %s150_s22 = int_to_ptr.vmem [resolvable:$true] %s149_s22 }
   0x6   : > { %s161_s25 = sshll.u32 %s635_s2, 4  ;;  %s539_s26 = smov [#allocation4]   ;;  %s162_s25 = int_to_ptr.hbm [resolvable:$true] %s161_s25 }
   0x7   : > { %p437_p4 = pneg %p581_p3  ;;  %s163_s27 = sshll.u32 %s539_s26, 4  ;;  %s164_s27 = int_to_ptr.vmem [resolvable:$true] %s163_s27 }
   0x8   : > { %s540_s28 = smov 128   ;;  %s541_s29 = smov 8  }
   0x9   : > { %p438_p5 = pnand %p444_p2, %p437_p4  ;;  %189 = sbr.rel (%p581_p3) target bundleno = 581 (0x245), region = 36 }
   0xb   : > { %440 = dma.hbm_to_vmem [thread:$0]  (!%p438_p5), %s148_s18, 2048, %s150_s22, [#allocation3], %s540_s28, %s540_s28, %s541_s29  }
   0xc   : > { %443 = dma.hbm_to_vmem [thread:$0]  (!%p438_p5), %s162_s25, 2048, %s164_s27, [#allocation5], %s540_s28, %s540_s28, %s541_s29  }
   0xe   : > { %527 = dma.done.wait (%p444_p2), [#allocation3], 2048  }
   0xf   : > { %529 = vsyncadd (%p444_p2), [#allocation3], 4294965248 }
  0x10   : > { %531 = dma.done.wait (%p444_p2), [#allocation5], 2048  }
  0x11   : > { %533 = vsyncadd (%p444_p2), [#allocation5], 4294965248  ;;  %v244_v0 = vld [vmem:[#allocation2 + $0x78] sm:$0xff]  ;;  %v243_v1 = vld [vmem:[#allocation2 + $0x70] sm:$0xff]  ;;  %p219_p6 = scmp.lt.s32.totalorder %s576_s19, 1  ;;  %v270_v21 = vlaneseq }
  0x12   : > { %246 = vmatpush.msra.mxu0 %v244_v0  ;;  %v242_v2 = vld [vmem:[#allocation2 + $0x68] sm:$0xff]  ;;  %v241_v3 = vld [vmem:[#allocation2 + $0x60] sm:$0xff]  ;;  %v240_v4 = vld [vmem:[#allocation2 + $0x58] sm:$0xff] }
  0x13   : > { %v239_v5 = vld [vmem:[#allocation2 + $0x50] sm:$0xff]  ;;  %v238_v6 = vld [vmem:[#allocation2 + $0x48] sm:$0xff]  ;;  %v237_v7 = vld [vmem:[#allocation2 + $0x40] sm:$0xff]  ;;  %s640_s19 = smov (!%p219_p6, %s576_s19), 1  ;;  %v271_v23 = vand.u32 127, %v270_v21 }
  0x14   : > { %247 = vmatpush.msra.mxu0 %v243_v1  ;;  %v236_v8 = vld [vmem:[#allocation2 + $0x38] sm:$0xff]  ;;  %v235_v9 = vld [vmem:[#allocation2 + $0x30] sm:$0xff]  ;;  %v234_v10 = vld [vmem:[#allocation2 + $0x28] sm:$0xff]  ;;  %s425_s30 = sshll.u32 %s640_s19, 3 }
  0x15   : > { %v233_v11 = vld [vmem:[#allocation2 + $0x20] sm:$0xff]  ;;  %v232_v12 = vld [vmem:[#allocation2 + $0x18] sm:$0xff]  ;;  %v231_v13 = vld [vmem:[#allocation2 + $0x10] sm:$0xff]  ;;  %s222_s7 = scalar_lea.vmem %s633_s0, %s425_s30  ;;  %vm272_vm0 = vcmp.lt.s32.totalorder %v271_v23, 32  ;;  %s226_s12 = scalar_lea.vmem %s637_s4, %s425_s30 }
  0x16   : > { %248 = vmatpush.msra.mxu0 %v242_v2  ;;  %v230_v14 = vld [vmem:[#allocation2 + $0x8] sm:$0xff]  ;;  %v229_v15 = vld [vmem:[#allocation2] sm:$0xff]  ;;  %v314_v28 = vld [vmem:[#allocation4 + $0x78] sm:$0xff] }
  0x17   : > { %v612_v16 = vld [vmem:[%s222_s7] sm:$0xff]  ;;  %316 = vmatpush.msra.mxu1 %v314_v28  ;;  %v313_v29 = vld [vmem:[#allocation4 + $0x70] sm:$0xff]  ;;  %v312_v30 = vld [vmem:[#allocation4 + $0x68] sm:$0xff] }
  0x18   : > { %249 = vmatpush.msra.mxu0 %v241_v3  ;;  %v618_v17 = vld [vmem:[%s636_s3] sm:$0xff]  ;;  %v310_v32 = vld [vmem:[#allocation4 + $0x58] sm:$0xff]  ;;  %v309_v33 = vld [vmem:[#allocation4 + $0x50] sm:$0xff] }
  0x19   : > { %v245_v18 = vperm.slane %v618_v17, 0  ;;  %317 = vmatpush.msra.mxu1 %v313_v29  ;;  %v311_v31 = vld [vmem:[#allocation4 + $0x60] sm:$0xff]  ;;  %v308_v34 = vld [vmem:[#allocation4 + $0x48] sm:$0xff]  ;;  %v306_v36 = vld [vmem:[#allocation4 + $0x38] sm:$0xff]  ;;  %v291_v52 = vperm.slane %v618_v17, 2  ;;  %v294_v56 = vperm.slane %v618_v17, 3 }
  0x1a   : > { %250 = vmatpush.msra.mxu0 %v240_v4  ;;  %v307_v35 = vld [vmem:[#allocation4 + $0x40] sm:$0xff]  ;;  %v305_v37 = vld [vmem:[#allocation4 + $0x30] sm:$0xff]  ;;  %v304_v38 = vld [vmem:[#allocation4 + $0x28] sm:$0xff]  ;;  %v315_v61 = vperm.slane %v618_v17, 1 }
  0x1b   : > { %318 = vmatpush.msra.mxu1 %v312_v30  ;;  %v303_v39 = vld [vmem:[#allocation4 + $0x20] sm:$0xff]  ;;  %v302_v40 = vld [vmem:[#allocation4 + $0x18] sm:$0xff]  ;;  %v301_v41 = vld [vmem:[#allocation4 + $0x10] sm:$0xff] }
  0x1c   : > { %251 = vmatpush.msra.mxu0 %v239_v5  ;;  %v300_v42 = vld [vmem:[#allocation4 + $0x8] sm:$0xff]  ;;  %v299_v43 = vld [vmem:[#allocation4] sm:$0xff] }
  0x1d   : > { %319 = vmatpush.msra.mxu1 %v311_v31 }
  0x1e   : > { %252 = vmatpush.msra.mxu0 %v238_v6 }
  0x1f   : > { %320 = vmatpush.msra.mxu1 %v310_v32 }
  0x20   : > { %253 = vmatpush.msra.mxu0 %v237_v7 }
  0x21   : > { %321 = vmatpush.msra.mxu1 %v309_v33 }
  0x22   : > { %254 = vmatpush.msra.mxu0 %v236_v8 }
  0x23   : > { %322 = vmatpush.msra.mxu1 %v308_v34 }
  0x24   : > { %255 = vmatpush.msra.mxu0 %v235_v9 }
  0x25   : > { %323 = vmatpush.msra.mxu1 %v307_v35 }
  0x26   : > { %256 = vmatpush.msra.mxu0 %v234_v10 }
  0x27   : > { %324 = vmatpush.msra.mxu1 %v306_v36 }
  0x28   : > { %257 = vmatpush.msra.mxu0 %v233_v11 }
  0x29   : > { %325 = vmatpush.msra.mxu1 %v305_v37 }
  0x2a   : > { %258 = vmatpush.msra.mxu0 %v232_v12 }
  0x2b   : > { %326 = vmatpush.msra.mxu1 %v304_v38 }
  0x2c   : > { %259 = vmatpush.msra.mxu0 %v231_v13 }
  0x2d   : > { %327 = vmatpush.msra.mxu1 %v303_v39 }
  0x2e   : > { %260 = vmatpush.msra.mxu0 %v230_v14 }
  0x2f   : > { %328 = vmatpush.msra.mxu1 %v302_v40 }
  0x30   : > { %261 = vmatpush.msra.mxu0 %v229_v15 }
  0x31   : > { %262 = vmatmul.f32.vlgmr.msra.gmra.mxu0 %v612_v16  ;;  %329 = vmatpush.msra.mxu1 %v301_v41 }
  0x33   : > { %330 = vmatpush.msra.mxu1 %v300_v42 }
  0x35   : > { %331 = vmatpush.msra.mxu1 %v299_v43 }
  0xae   : > { %v263_v19 = vpop.f32.mrf.mxu0 }
  0xaf   : > { %v264_v20 = vadd.f32 %v263_v19, %v245_v18 }
  0xb1   : > { %266 = vadd.xlane.f32.xlu0 %v264_v20 }
 0x124   : > { %v267_v22 = vpop.xlane.xlu0 %266 }
 0x125   : > { %v268_v24 = vmul.f32 0.03125, %v267_v22 }
 0x127   : > { %v269_v25 = vsub.f32 %v264_v20, %v268_v24 }
 0x129   : > { %v273_v26 = vmul.f32 %v269_v25, %v269_v25 }
 0x12b   : > { %v276_v27 = vsel %vm272_vm0, %v273_v26, 0.0 }
 0x12c   : > { %277 = vadd.xlane.f32.xlu0 %v276_v27 }
 0x19f   : > { %v278_v44 = vpop.xlane.xlu0 %277 }
 0x1a0   : > { %v279_v45 = vmul.f32 0.03125, %v278_v44 }
 0x1a2   : > { %v280_v46 = vadd.f32 1e-05, %v279_v45 }
 0x1a4   : > { %460 = vrsqrt.f32 %v280_v46  ;;  %vm287_vm2 = vweird.f32 %v280_v46 }
 0x1aa   : > { %v461_v47 = vpop.eup %460 }
 0x1ab   : > { %v282_v48 = vmul.f32 %v461_v47, %v280_v46  ;;  %vm288_vm1 = vweird.f32 %v461_v47 }
 0x1ac   : > { %vm289_vm3 = vmor %vm287_vm2, %vm288_vm1 }
 0x1ad   : > { %v283_v49 = vmul.f32 %v461_v47, %v282_v48 }
 0x1af   : > { %v284_v50 = vmul.f32 0.5, %v283_v49 }
 0x1b1   : > { %v285_v51 = vsub.f32 1.5, %v284_v50 }
 0x1b3   : > { %v286_v53 = vmul.f32 %v461_v47, %v285_v51 }
 0x1b5   : > { %v290_v54 = vsel %vm289_vm3, %v461_v47, %v286_v53 }
 0x1b6   : > { %v292_v55 = vmul.f32 %v291_v52, %v290_v54 }
 0x1b8   : > { %v293_v57 = vmul.f32 %v292_v55, %v269_v25 }
 0x1ba   : > { %v295_v58 = vadd.f32 %v294_v56, %v293_v57 }
 0x1bc   : > { %vm296_vm4 = vcmp.gt.f32.partialorder %v295_v58, 0.0  ;;  %v297_v59 = vmul.f32 0.01, %v295_v58 }
 0x1be   : > { %v298_v60 = vsel %vm296_vm4, %v295_v58, %v297_v59 }
 0x1bf   : > { %332 = vmatmul.f32.vlgmr.msra.gmra.mxu1 %v298_v60 }
 0x23c   : > { %v333_v62 = vpop.f32.mrf.mxu1 }
 0x23d   : > { %v334_v63 = vadd.f32 %v333_v62, %v315_v61 }
 0x23f   : > { %v336_v0 = vadd.f32 %v334_v63, %v612_v16 }
 0x241   : > { %vm337_vm5 = vcmp.gt.f32.partialorder %v336_v0, 0.0  ;;  %v338_v1 = vmul.f32 0.01, %v336_v0 }
 0x243   : > { %v339_v2 = vsel %vm337_vm5, %v336_v0, %v338_v1 }
 0x244   : > { %340 = vst [vmem:[%s226_s12] sm:$0xff] %v339_v2 }
 0x245 PF: > { %s16_s15 = sadd.s32 1, %s536_s15  }
 0x246   : > { %p13_p7 = scmp.ge.s32.totalorder %s16_s15, 4  }
 0x248   :  { %15 = sbr.rel (!%p13_p7) target bundleno = 2 (0x2), region = 75 }
 0x24d   :  { %360 = vsyncpa [#allocation3], 1 }
 0x24e   :  { %362 = vsyncpa [#allocation3 + $0x1], 1 }
 0x24f   :  { %363 = vsyncpa [#allocation5], 1 }

// kernel: _residual_block_impl.1
= control target key start
LH: loop header
LB: loop body
LE: loop exit
PB: predicated region body
PF: predicated region fallthrough
CT: control target
= control target key end

     0   :  { %9 = vsyncpa [#allocation3], 0  ;;  %s633_s0 = inlined_call_operand.vmem [shape: f32[16,128], index: 0, kind: input, shape index: {}]   ;;  %s634_s1 = inlined_call_operand.hbm [shape: f32[128,128], index: 1, kind: input, shape index: {}]   ;;  %s635_s2 = inlined_call_operand.hbm [shape: f32[128,128], index: 2, kind: input, shape index: {}]   ;;  %s636_s3 = inlined_call_operand.vmem [shape: f32[8,128], index: 3, kind: input, shape index: {}]   ;;  %s637_s4 = inlined_call_operand.vmem [shape: f32[16,128], index: 4, kind: output, shape index: {}]  }
   0x1   :  { %10 = vsyncpa [#allocation5], 0  ;;  %s567_s15 = smov 0  }
   0x2 LB: > { %s147_s18 = sshll.u32 %s634_s1, 4  ;;  %s576_s19 = sadd.s32 4294967295, %s536_s15   ;;  %s536_s15 = sphi %s567_s15, %s16_s15   ;;  %s148_s18 = int_to_ptr.hbm [resolvable:$true] %s147_s18 }
   0x3   : > { %p418_p0 = scmp.ge.s32.totalorder %s536_s15, 1  ;;  %p136_p1 = scmp.lt.s32.totalorder %s536_s15, 3 }
   0x4   : > { %p444_p2 = scmp.eq.s32.totalorder %s576_s19, 0  ;;  %s538_s21 = smov [#allocation2]  }
   0x5   : > { %p581_p3 = pnand %p418_p0, %p136_p1  ;;  %s149_s22 = sshll.u32 %s538_s21, 4  ;;  %s150_s22 = int_to_ptr.vmem [resolvable:$true] %s149_s22 }
   0x6   : > { %s161_s25 = sshll.u32 %s635_s2, 4  ;;  %s539_s26 = smov [#allocation4]   ;;  %s162_s25 = int_to_ptr.hbm [resolvable:$true] %s161_s25 }
   0x7   : > { %p437_p4 = pneg %p581_p3  ;;  %s163_s27 = sshll.u32 %s539_s26, 4  ;;  %s164_s27 = int_to_ptr.vmem [resolvable:$true] %s163_s27 }
   0x8   : > { %s540_s28 = smov 128   ;;  %s541_s29 = smov 8  }
   0x9   : > { %p438_p5 = pnand %p444_p2, %p437_p4  ;;  %189 = sbr.rel (%p581_p3) target bundleno = 581 (0x245), region = 36 }
   0xb   : > { %440 = dma.hbm_to_vmem [thread:$0]  (!%p438_p5), %s148_s18, 2048, %s150_s22, [#allocation3], %s540_s28, %s540_s28, %s541_s29  }
   0xc   : > { %443 = dma.hbm_to_vmem [thread:$0]  (!%p438_p5), %s162_s25, 2048, %s164_s27, [#allocation5], %s540_s28, %s540_s28, %s541_s29  }
   0xe   : > { %527 = dma.done.wait (%p444_p2), [#allocation3], 2048  }
   0xf   : > { %529 = vsyncadd (%p444_p2), [#allocation3], 4294965248 }
  0x10   : > { %531 = dma.done.wait (%p444_p2), [#allocation5], 2048  }
  0x11   : > { %533 = vsyncadd (%p444_p2), [#allocation5], 4294965248  ;;  %v244_v0 = vld [vmem:[#allocation2 + $0x78] sm:$0xff]  ;;  %v243_v1 = vld [vmem:[#allocation2 + $0x70] sm:$0xff]  ;;  %p219_p6 = scmp.lt.s32.totalorder %s576_s19, 1  ;;  %v270_v21 = vlaneseq }
  0x12   : > { %246 = vmatpush.msra.mxu0 %v244_v0  ;;  %v242_v2 = vld [vmem:[#allocation2 + $0x68] sm:$0xff]  ;;  %v241_v3 = vld [vmem:[#allocation2 + $0x60] sm:$0xff]  ;;  %v240_v4 = vld [vmem:[#allocation2 + $0x58] sm:$0xff] }
  0x13   : > { %v239_v5 = vld [vmem:[#allocation2 + $0x50] sm:$0xff]  ;;  %v238_v6 = vld [vmem:[#allocation2 + $0x48] sm:$0xff]  ;;  %v237_v7 = vld [vmem:[#allocation2 + $0x40] sm:$0xff]  ;;  %s640_s19 = smov (!%p219_p6, %s576_s19), 1  ;;  %v271_v23 = vand.u32 127, %v270_v21 }
  0x14   : > { %247 = vmatpush.msra.mxu0 %v243_v1  ;;  %v236_v8 = vld [vmem:[#allocation2 + $0x38] sm:$0xff]  ;;  %v235_v9 = vld [vmem:[#allocation2 + $0x30] sm:$0xff]  ;;  %v234_v10 = vld [vmem:[#allocation2 + $0x28] sm:$0xff]  ;;  %s425_s30 = sshll.u32 %s640_s19, 3 }
  0x15   : > { %v233_v11 = vld [vmem:[#allocation2 + $0x20] sm:$0xff]  ;;  %v232_v12 = vld [vmem:[#allocation2 + $0x18] sm:$0xff]  ;;  %v231_v13 = vld [vmem:[#allocation2 + $0x10] sm:$0xff]  ;;  %s222_s7 = scalar_lea.vmem %s633_s0, %s425_s30  ;;  %vm272_vm0 = vcmp.lt.s32.totalorder %v271_v23, 32  ;;  %s226_s12 = scalar_lea.vmem %s637_s4, %s425_s30 }
  0x16   : > { %248 = vmatpush.msra.mxu0 %v242_v2  ;;  %v230_v14 = vld [vmem:[#allocation2 + $0x8] sm:$0xff]  ;;  %v229_v15 = vld [vmem:[#allocation2] sm:$0xff]  ;;  %v314_v28 = vld [vmem:[#allocation4 + $0x78] sm:$0xff] }
  0x17   : > { %v612_v16 = vld [vmem:[%s222_s7] sm:$0xff]  ;;  %316 = vmatpush.msra.mxu1 %v314_v28  ;;  %v313_v29 = vld [vmem:[#allocation4 + $0x70] sm:$0xff]  ;;  %v312_v30 = vld [vmem:[#allocation4 + $0x68] sm:$0xff] }
  0x18   : > { %249 = vmatpush.msra.mxu0 %v241_v3  ;;  %v618_v17 = vld [vmem:[%s636_s3] sm:$0xff]  ;;  %v310_v32 = vld [vmem:[#allocation4 + $0x58] sm:$0xff]  ;;  %v309_v33 = vld [vmem:[#allocation4 + $0x50] sm:$0xff] }
  0x19   : > { %v245_v18 = vperm.slane %v618_v17, 0  ;;  %317 = vmatpush.msra.mxu1 %v313_v29  ;;  %v311_v31 = vld [vmem:[#allocation4 + $0x60] sm:$0xff]  ;;  %v308_v34 = vld [vmem:[#allocation4 + $0x48] sm:$0xff]  ;;  %v306_v36 = vld [vmem:[#allocation4 + $0x38] sm:$0xff]  ;;  %v291_v52 = vperm.slane %v618_v17, 2  ;;  %v294_v56 = vperm.slane %v618_v17, 3 }
  0x1a   : > { %250 = vmatpush.msra.mxu0 %v240_v4  ;;  %v307_v35 = vld [vmem:[#allocation4 + $0x40] sm:$0xff]  ;;  %v305_v37 = vld [vmem:[#allocation4 + $0x30] sm:$0xff]  ;;  %v304_v38 = vld [vmem:[#allocation4 + $0x28] sm:$0xff]  ;;  %v315_v61 = vperm.slane %v618_v17, 1 }
  0x1b   : > { %318 = vmatpush.msra.mxu1 %v312_v30  ;;  %v303_v39 = vld [vmem:[#allocation4 + $0x20] sm:$0xff]  ;;  %v302_v40 = vld [vmem:[#allocation4 + $0x18] sm:$0xff]  ;;  %v301_v41 = vld [vmem:[#allocation4 + $0x10] sm:$0xff] }
  0x1c   : > { %251 = vmatpush.msra.mxu0 %v239_v5  ;;  %v300_v42 = vld [vmem:[#allocation4 + $0x8] sm:$0xff]  ;;  %v299_v43 = vld [vmem:[#allocation4] sm:$0xff] }
  0x1d   : > { %319 = vmatpush.msra.mxu1 %v311_v31 }
  0x1e   : > { %252 = vmatpush.msra.mxu0 %v238_v6 }
  0x1f   : > { %320 = vmatpush.msra.mxu1 %v310_v32 }
  0x20   : > { %253 = vmatpush.msra.mxu0 %v237_v7 }
  0x21   : > { %321 = vmatpush.msra.mxu1 %v309_v33 }
  0x22   : > { %254 = vmatpush.msra.mxu0 %v236_v8 }
  0x23   : > { %322 = vmatpush.msra.mxu1 %v308_v34 }
  0x24   : > { %255 = vmatpush.msra.mxu0 %v235_v9 }
  0x25   : > { %323 = vmatpush.msra.mxu1 %v307_v35 }
  0x26   : > { %256 = vmatpush.msra.mxu0 %v234_v10 }
  0x27   : > { %324 = vmatpush.msra.mxu1 %v306_v36 }
  0x28   : > { %257 = vmatpush.msra.mxu0 %v233_v11 }
  0x29   : > { %325 = vmatpush.msra.mxu1 %v305_v37 }
  0x2a   : > { %258 = vmatpush.msra.mxu0 %v232_v12 }
  0x2b   : > { %326 = vmatpush.msra.mxu1 %v304_v38 }
  0x2c   : > { %259 = vmatpush.msra.mxu0 %v231_v13 }
  0x2d   : > { %327 = vmatpush.msra.mxu1 %v303_v39 }
  0x2e   : > { %260 = vmatpush.msra.mxu0 %v230_v14 }
  0x2f   : > { %328 = vmatpush.msra.mxu1 %v302_v40 }
  0x30   : > { %261 = vmatpush.msra.mxu0 %v229_v15 }
  0x31   : > { %262 = vmatmul.f32.vlgmr.msra.gmra.mxu0 %v612_v16  ;;  %329 = vmatpush.msra.mxu1 %v301_v41 }
  0x33   : > { %330 = vmatpush.msra.mxu1 %v300_v42 }
  0x35   : > { %331 = vmatpush.msra.mxu1 %v299_v43 }
  0xae   : > { %v263_v19 = vpop.f32.mrf.mxu0 }
  0xaf   : > { %v264_v20 = vadd.f32 %v263_v19, %v245_v18 }
  0xb1   : > { %266 = vadd.xlane.f32.xlu0 %v264_v20 }
 0x124   : > { %v267_v22 = vpop.xlane.xlu0 %266 }
 0x125   : > { %v268_v24 = vmul.f32 0.03125, %v267_v22 }
 0x127   : > { %v269_v25 = vsub.f32 %v264_v20, %v268_v24 }
 0x129   : > { %v273_v26 = vmul.f32 %v269_v25, %v269_v25 }
 0x12b   : > { %v276_v27 = vsel %vm272_vm0, %v273_v26, 0.0 }
 0x12c   : > { %277 = vadd.xlane.f32.xlu0 %v276_v27 }
 0x19f   : > { %v278_v44 = vpop.xlane.xlu0 %277 }
 0x1a0   : > { %v279_v45 = vmul.f32 0.03125, %v278_v44 }
 0x1a2   : > { %v280_v46 = vadd.f32 1e-05, %v279_v45 }
 0x1a4   : > { %460 = vrsqrt.f32 %v280_v46  ;;  %vm287_vm2 = vweird.f32 %v280_v46 }
 0x1aa   : > { %v461_v47 = vpop.eup %460 }
 0x1ab   : > { %v282_v48 = vmul.f32 %v461_v47, %v280_v46  ;;  %vm288_vm1 = vweird.f32 %v461_v47 }
 0x1ac   : > { %vm289_vm3 = vmor %vm287_vm2, %vm288_vm1 }
 0x1ad   : > { %v283_v49 = vmul.f32 %v461_v47, %v282_v48 }
 0x1af   : > { %v284_v50 = vmul.f32 0.5, %v283_v49 }
 0x1b1   : > { %v285_v51 = vsub.f32 1.5, %v284_v50 }
 0x1b3   : > { %v286_v53 = vmul.f32 %v461_v47, %v285_v51 }
 0x1b5   : > { %v290_v54 = vsel %vm289_vm3, %v461_v47, %v286_v53 }
 0x1b6   : > { %v292_v55 = vmul.f32 %v291_v52, %v290_v54 }
 0x1b8   : > { %v293_v57 = vmul.f32 %v292_v55, %v269_v25 }
 0x1ba   : > { %v295_v58 = vadd.f32 %v294_v56, %v293_v57 }
 0x1bc   : > { %vm296_vm4 = vcmp.gt.f32.partialorder %v295_v58, 0.0  ;;  %v297_v59 = vmul.f32 0.01, %v295_v58 }
 0x1be   : > { %v298_v60 = vsel %vm296_vm4, %v295_v58, %v297_v59 }
 0x1bf   : > { %332 = vmatmul.f32.vlgmr.msra.gmra.mxu1 %v298_v60 }
 0x23c   : > { %v333_v62 = vpop.f32.mrf.mxu1 }
 0x23d   : > { %v334_v63 = vadd.f32 %v333_v62, %v315_v61 }
 0x23f   : > { %v336_v0 = vadd.f32 %v334_v63, %v612_v16 }
 0x241   : > { %vm337_vm5 = vcmp.gt.f32.partialorder %v336_v0, 0.0  ;;  %v338_v1 = vmul.f32 0.01, %v336_v0 }
 0x243   : > { %v339_v2 = vsel %vm337_vm5, %v336_v0, %v338_v1 }
 0x244   : > { %340 = vst [vmem:[%s226_s12] sm:$0xff] %v339_v2 }
 0x245 PF: > { %s16_s15 = sadd.s32 1, %s536_s15  }
 0x246   : > { %p13_p7 = scmp.ge.s32.totalorder %s16_s15, 4  }
 0x248   :  { %15 = sbr.rel (!%p13_p7) target bundleno = 2 (0x2), region = 75 }
 0x24d   :  { %360 = vsyncpa [#allocation3], 1 }
 0x24e   :  { %362 = vsyncpa [#allocation3 + $0x1], 1 }
 0x24f   :  { %363 = vsyncpa [#allocation5], 1 }

</bundles_post_ra>
